<compile_context>
chip_gen: v7x
topology: tpu7x:2x2x1
jax: 0.10.0
libtpu: 0.0.40
codegen_flags: <defaults>
</compile_context>

<pallas_src>
import jax
import jax.numpy as jnp
from jax.experimental import pallas as pl
from jax.experimental.pallas import tpu as pltpu


def _round_up(n: int, m: int) -> int:
    return ((n + m - 1) // m) * m


def actor_mlp_kernel(x_ref, w1_ref, b1_ref, w2_ref, b2_ref, w3_ref, b3_ref,
                     o_ref):
    # Layer 1: (TB, S) @ (S, H) + (1, H) -> ReLU
    h1 = jnp.dot(x_ref[...], w1_ref[...], preferred_element_type=jnp.float32)
    h1 = jnp.maximum(h1 + b1_ref[...], 0.0)

    # Layer 2: (TB, H) @ (H, H) + (1, H) -> ReLU
    h2 = jnp.dot(h1, w2_ref[...], preferred_element_type=jnp.float32)
    h2 = jnp.maximum(h2 + b2_ref[...], 0.0)

    # Layer 3: (TB, H) @ (H, A) + (1, A) -> Sigmoid
    logits = jnp.dot(h2, w3_ref[...], preferred_element_type=jnp.float32)
    logits = logits + b3_ref[...]
    # exp and the approximate reciprocal both live on the EUP slot; the VALU stays free.
    sig = pl.reciprocal(1.0 + jnp.exp(-logits), approx=True)
    o_ref[...] = sig.astype(o_ref.dtype)


def actor_forward(x, params, *, block_b: int = 512):
    """x: (B, state_dim) f32.  params: dict of w1,b1,w2,b2,w3,b3 (f32)."""
    w1, b1 = params["w1"], params["b1"]
    w2, b2 = params["w2"], params["b2"]
    w3, b3 = params["w3"], params["b3"]

    B, S = x.shape
    H = w1.shape[1]
    A = w3.shape[1]

    # Batch tile: 8-sublane aligned; pad the batch so the grid divides evenly.
    TB = min(block_b, _round_up(B, 8))
    Bp = _round_up(B, TB)
    if Bp != B:
        x = jnp.pad(x, ((0, Bp - B), (0, 0)))
    grid = (Bp // TB,)

    # Constant index_map -> same block every step -> weights fetched once, VMEM-resident.
    def resident(a):
        return pl.BlockSpec(a.shape, lambda i: (0,) * a.ndim)

    # Advisory cost so XLA can overlap this small custom call with surrounding work.
    flops_per_row = 2 * (S * H + H * H + H * A) + 4 * H + 2 * A
    weight_bytes = 4 * (S * H + H * H + H * A + 2 * H + A)
    cost = pl.CostEstimate(
        flops=Bp * flops_per_row,
        transcendentals=Bp * A,
        bytes_accessed=4 * Bp * (S + A) + weight_bytes,
    )

    out = pl.pallas_call(
        actor_mlp_kernel,
        out_shape=jax.ShapeDtypeStruct((Bp, A), jnp.float32),
        grid=grid,
        in_specs=[
            pl.BlockSpec((TB, S), lambda i: (i, 0)),   # x: tiled over batch
            resident(w1), resident(b1),
            resident(w2), resident(b2),
            resident(w3), resident(b3),
        ],
        out_specs=pl.BlockSpec((TB, A), lambda i: (i, 0)),
        compiler_params=pltpu.CompilerParams(
            dimension_semantics=("parallel",)),       # megacore / v7x 2-TC sharding
        cost_estimate=cost,
    )(x, w1, b1, w2, b2, w3, b3)

    return out[:B] if Bp != B else out


def init_actor_params(key, state_dim, action_dim, hidden_dim=64):
    """Deterministic init mimicking PyTorch nn.Linear default:
       U(-1/sqrt(fan_in), 1/sqrt(fan_in)) for both weight and bias."""
    def linear(k, fan_in, fan_out):
        kw, kb = jax.random.split(k)
        bound = 1.0 / jnp.sqrt(fan_in)
        w = jax.random.uniform(kw, (fan_in, fan_out), jnp.float32,
                               -bound, bound)
        b = jax.random.uniform(kb, (1, fan_out), jnp.float32, -bound, bound)
        return w, b

    k1, k2, k3 = jax.random.split(key, 3)
    w1, b1 = linear(k1, state_dim, hidden_dim)
    w2, b2 = linear(k2, hidden_dim, hidden_dim)
    w3, b3 = linear(k3, hidden_dim, action_dim)
    return {"w1": w1, "b1": b1, "w2": w2, "b2": b2, "w3": w3, "b3": b3}


if __name__ == "__main__":
    key = jax.random.PRNGKey(0)
    k_params, k_x = jax.random.split(key)

    batch = 8
    state_dim = 16
    action_dim = 8
    hidden_dim = 64

    params = init_actor_params(k_params, state_dim, action_dim, hidden_dim)
    x = jax.random.normal(k_x, (batch, state_dim), jnp.float32)

    out = actor_forward(x, params)
    out = jax.block_until_ready(out)

    # Sanity check against a pure-JAX reference (looser tol: approx EUP reciprocal).
    def ref(x, p):
        h = jnp.maximum(x @ p["w1"] + p["b1"], 0.0)
        h = jnp.maximum(h @ p["w2"] + p["b2"], 0.0)
        return jax.nn.sigmoid(h @ p["w3"] + p["b3"])

    expected = ref(x, params)
    assert out.shape == (batch, action_dim)
    assert jnp.allclose(out, expected, atol=2e-3, rtol=2e-3)

    print("KERNEL_OK")
</pallas_src>

<mosaic_0001>
module attributes {stable_mosaic.version = 11 : i64} {
  func.func @actor_mlp_kernel(%arg0: i32, %arg1: memref<8x16xf32, #tpu.memory_space<vmem>>, %arg2: memref<16x64xf32, #tpu.memory_space<vmem>>, %arg3: memref<1x64xf32, #tpu.memory_space<vmem>>, %arg4: memref<64x64xf32, #tpu.memory_space<vmem>>, %arg5: memref<1x64xf32, #tpu.memory_space<vmem>>, %arg6: memref<64x8xf32, #tpu.memory_space<vmem>>, %arg7: memref<1x8xf32, #tpu.memory_space<vmem>>, %arg8: memref<8x8xf32, #tpu.memory_space<vmem>>) attributes {dimension_semantics = [#tpu.dimension_semantics<parallel>], iteration_bounds = array<i64: 1>, scalar_prefetch = 0 : i64, scratch_operands = 0 : i64, tpu.core_type = #tpu.core_type<tc>, window_params = [{transform_indices = @transform_0, window_bounds = array<i64: 8, 16>}, {pipeline_mode = #tpu.pipeline_mode<synchronous>, transform_indices = @transform_1, window_bounds = array<i64: 16, 64>}, {pipeline_mode = #tpu.pipeline_mode<synchronous>, transform_indices = @transform_2, window_bounds = array<i64: 1, 64>}, {pipeline_mode = #tpu.pipeline_mode<synchronous>, transform_indices = @transform_3, window_bounds = array<i64: 64, 64>}, {pipeline_mode = #tpu.pipeline_mode<synchronous>, transform_indices = @transform_4, window_bounds = array<i64: 1, 64>}, {pipeline_mode = #tpu.pipeline_mode<synchronous>, transform_indices = @transform_5, window_bounds = array<i64: 64, 8>}, {pipeline_mode = #tpu.pipeline_mode<synchronous>, transform_indices = @transform_6, window_bounds = array<i64: 1, 8>}, {transform_indices = @transform_7, window_bounds = array<i64: 8, 8>}]} {
    %c0 = arith.constant 0 : index
    %c0_0 = arith.constant 0 : index
    %0 = vector.load %arg1[%c0, %c0_0] : memref<8x16xf32, #tpu.memory_space<vmem>>, vector<8x16xf32>
    %c0_1 = arith.constant 0 : index
    %c0_2 = arith.constant 0 : index
    %1 = vector.load %arg2[%c0_1, %c0_2] : memref<16x64xf32, #tpu.memory_space<vmem>>, vector<16x64xf32>
    %cst = arith.constant dense<0.000000e+00> : vector<8x64xf32>
    %2 = tpu.matmul %0, %1, %cst {dimension_numbers = #tpu.dot_dimension_numbers<[1], [0], [0], [1], [0, 0, 1, 1], [], []>} : vector<8x16xf32>, vector<16x64xf32>, vector<8x64xf32> -> vector<8x64xf32>
    %c0_3 = arith.constant 0 : index
    %c0_4 = arith.constant 0 : index
    %3 = vector.load %arg3[%c0_3, %c0_4] : memref<1x64xf32, #tpu.memory_space<vmem>>, vector<1x64xf32>
    %4 = vector.broadcast %3 : vector<1x64xf32> to vector<8x64xf32>
    %5 = arith.addf %2, %4 : vector<8x64xf32>
    %cst_5 = arith.constant 0.000000e+00 : f32
    %6 = vector.broadcast %cst_5 : f32 to vector<8x64xf32>
    %7 = arith.maximumf %5, %6 : vector<8x64xf32>
    %c0_6 = arith.constant 0 : index
    %c0_7 = arith.constant 0 : index
    %8 = vector.load %arg4[%c0_6, %c0_7] : memref<64x64xf32, #tpu.memory_space<vmem>>, vector<64x64xf32>
    %cst_8 = arith.constant dense<0.000000e+00> : vector<8x64xf32>
    %9 = tpu.matmul %7, %8, %cst_8 {dimension_numbers = #tpu.dot_dimension_numbers<[1], [0], [0], [1], [0, 0, 1, 1], [], []>} : vector<8x64xf32>, vector<64x64xf32>, vector<8x64xf32> -> vector<8x64xf32>
    %c0_9 = arith.constant 0 : index
    %c0_10 = arith.constant 0 : index
    %10 = vector.load %arg5[%c0_9, %c0_10] : memref<1x64xf32, #tpu.memory_space<vmem>>, vector<1x64xf32>
    %11 = vector.broadcast %10 : vector<1x64xf32> to vector<8x64xf32>
    %12 = arith.addf %9, %11 : vector<8x64xf32>
    %cst_11 = arith.constant 0.000000e+00 : f32
    %13 = vector.broadcast %cst_11 : f32 to vector<8x64xf32>
    %14 = arith.maximumf %12, %13 : vector<8x64xf32>
    %c0_12 = arith.constant 0 : index
    %c0_13 = arith.constant 0 : index
    %15 = vector.load %arg6[%c0_12, %c0_13] : memref<64x8xf32, #tpu.memory_space<vmem>>, vector<64x8xf32>
    %cst_14 = arith.constant dense<0.000000e+00> : vector<8x8xf32>
    %16 = tpu.matmul %14, %15, %cst_14 {dimension_numbers = #tpu.dot_dimension_numbers<[1], [0], [0], [1], [0, 0, 1, 1], [], []>} : vector<8x64xf32>, vector<64x8xf32>, vector<8x8xf32> -> vector<8x8xf32>
    %c0_15 = arith.constant 0 : index
    %c0_16 = arith.constant 0 : index
    %17 = vector.load %arg7[%c0_15, %c0_16] : memref<1x8xf32, #tpu.memory_space<vmem>>, vector<1x8xf32>
    %18 = vector.broadcast %17 : vector<1x8xf32> to vector<8x8xf32>
    %19 = arith.addf %16, %18 : vector<8x8xf32>
    %cst_17 = arith.constant 0.000000e+00 : f32
    %20 = vector.broadcast %cst_17 : f32 to vector<8x8xf32>
    %21 = arith.subf %20, %19 : vector<8x8xf32>
    %22 = math.exp %21 : vector<8x8xf32>
    %cst_18 = arith.constant 1.000000e+00 : f32
    %23 = vector.broadcast %cst_18 : f32 to vector<8x8xf32>
    %24 = arith.addf %23, %22 : vector<8x8xf32>
    %25 = tpu.reciprocal %24 {approx = true} : vector<8x8xf32> -> vector<8x8xf32>
    %c0_19 = arith.constant 0 : index
    %c0_20 = arith.constant 0 : index
    %26 = vector.load %arg8[%c0_19, %c0_20] : memref<8x8xf32, #tpu.memory_space<vmem>>, vector<8x8xf32>
    tpu.vector_store %arg8[%c0_19, %c0_20], %25 {strides = array<i32>} : memref<8x8xf32, #tpu.memory_space<vmem>>, vector<8x8xf32>,
    return
  }
  func.func @transform_0(%arg0: i32) -> (i32, i32) {
    %c0_i32 = arith.constant 0 : i32
    %c0_i32_0 = arith.constant 0 : i32
    return %arg0, %c0_i32 : i32, i32
  }
  func.func @transform_1(%arg0: i32) -> (i32, i32) {
    %c0_i32 = arith.constant 0 : i32
    %c0_i32_0 = arith.constant 0 : i32
    %c0_i32_1 = arith.constant 0 : i32
    return %c0_i32, %c0_i32_0 : i32, i32
  }
  func.func @transform_2(%arg0: i32) -> (i32, i32) {
    %c0_i32 = arith.constant 0 : i32
    %c0_i32_0 = arith.constant 0 : i32
    %c0_i32_1 = arith.constant 0 : i32
    return %c0_i32, %c0_i32_0 : i32, i32
  }
  func.func @transform_3(%arg0: i32) -> (i32, i32) {
    %c0_i32 = arith.constant 0 : i32
    %c0_i32_0 = arith.constant 0 : i32
    %c0_i32_1 = arith.constant 0 : i32
    return %c0_i32, %c0_i32_0 : i32, i32
  }
  func.func @transform_4(%arg0: i32) -> (i32, i32) {
    %c0_i32 = arith.constant 0 : i32
    %c0_i32_0 = arith.constant 0 : i32
    %c0_i32_1 = arith.constant 0 : i32
    return %c0_i32, %c0_i32_0 : i32, i32
  }
  func.func @transform_5(%arg0: i32) -> (i32, i32) {
    %c0_i32 = arith.constant 0 : i32
    %c0_i32_0 = arith.constant 0 : i32
    %c0_i32_1 = arith.constant 0 : i32
    return %c0_i32, %c0_i32_0 : i32, i32
  }
  func.func @transform_6(%arg0: i32) -> (i32, i32) {
    %c0_i32 = arith.constant 0 : i32
    %c0_i32_0 = arith.constant 0 : i32
    %c0_i32_1 = arith.constant 0 : i32
    return %c0_i32, %c0_i32_0 : i32, i32
  }
  func.func @transform_7(%arg0: i32) -> (i32, i32) {
    %c0_i32 = arith.constant 0 : i32
    %c0_i32_0 = arith.constant 0 : i32
    return %arg0, %c0_i32 : i32, i32
  }
}

</mosaic_0001>

<bundles_post_ra>
// kernel: tpu_custom_call.1
= control target key start
LH: loop header
LB: loop body
LE: loop exit
PB: predicated region body
PF: predicated region fallthrough
CT: control target
= control target key end

     0   :  { %12 = vsyncpa [#allocation3], 0  ;;  %s615_s0 = inlined_call_operand.hbm [shape: f32[8,16], index: 0, kind: input, shape index: {}]   ;;  %s616_s1 = inlined_call_operand.vmem [shape: f32[16,64], index: 1, kind: input, shape index: {}]   ;;  %s617_s2 = inlined_call_operand.vmem [shape: f32[1,64], index: 2, kind: input, shape index: {}]   ;;  %s618_s3 = inlined_call_operand.vmem [shape: f32[64,64], index: 3, kind: input, shape index: {}]   ;;  %s619_s4 = inlined_call_operand.vmem [shape: f32[1,64], index: 4, kind: input, shape index: {}]   ;;  %s620_s5 = inlined_call_operand.vmem [shape: f32[64,8], index: 5, kind: input, shape index: {}]   ;;  %s621_s6 = inlined_call_operand.vmem [shape: f32[1,8], index: 6, kind: input, shape index: {}]   ;;  %s622_s7 = inlined_call_operand.hbm [shape: f32[8,8], index: 7, kind: output, shape index: {}]  }
   0x1   :  { %13 = vsyncpa [#allocation4], 0  ;;  %s480_s24 = smov [#allocation2]   ;;  %s432_s28 = scalar_lea.hbm %s615_s0, 128 }
   0x2   :  { %s20_s25 = sshll.u32 %s480_s24, 4  ;;  %p433_p0 = scmp.ne.s32.totalorder %s615_s0, %s432_s28  ;;  %s21_s25 = int_to_ptr.vmem [resolvable:$true] %s20_s25 }
   0x3   :  { %p436_p1 = scmp.lt.u32.totalorder %s432_s28, %s615_s0 }
   0x5   :  { %p438_p2 = pnand %p436_p1, %p433_p0 }
   0x7   :  { %441 = shalt.err (!%p438_p2)
}
   0x8   :  { %s442_s10 = scalar_lea.vmem %s21_s25, 128  ;;  %p447_p4 = scmp.lt.s32.totalorder %s21_s25, %s21_s25 }
   0x9   :  { %p443_p3 = scmp.ne.s32.totalorder %s21_s25, %s442_s10  ;;  %p448_p5 = scmp.lt.s32.totalorder %s442_s10, %s442_s10 }
   0xb   :  { %p449_p6 = por %p448_p5, %p447_p4 }
   0xd   :  { %p450_p7 = pnand %p449_p6, %p443_p3 }
   0xf   :  { %453 = shalt.err (!%p450_p7)
}
  0x10   :  { %23 = dma.hbm_to_vmem [thread:$0]  %s615_s0, 128, %s21_s25, [#allocation3]  }
  0x11   :  { %476 = dma.done.wait [#allocation3], 128  }
  0x12   :  { %477 = vsyncadd [#allocation3], 4294967168  ;;  %v481_v0 = vmov 0.0|0.0   ;;  %vm482_vm0 = vmmov 0   ;;  %v483_v1 = vmov 0.0   ;;  %v40_v2 = vld [vmem:[%s616_s1] sm:$0xff] }
  0x13   :  { %396 = vmatprep.subr.bf16.mxu0 %v481_v0  ;;  %355 = vmatprep.mubr.msk.f32.mxu0 %vm482_vm0, %v483_v1  ;;  %v41_v3 = vld [vmem:[%s616_s1 + $0x8] sm:$0xff]  ;;  %v124_v5 = vld [vmem:[%s618_s3] sm:$0xff]  ;;  %v126_v7 = vld [vmem:[%s618_s3 + $0x10] sm:$0xff]  ;;  %vm49_vm1 = vcmask 130048   ;;  %vm139_vm2 = vcmask 523264   ;;  %vm307_vm3 = vcmask 64512  }
  0x14   :  { %399 = vmatprep.subr.bf16.mxu1 %v481_v0  ;;  %374 = vmatprep.mubr.msk.f32.mxu1 %vm482_vm0, %v483_v1  ;;  %v397_v4 = vpack.c.bf16 %v41_v3, %v40_v2  ;;  %v125_v6 = vld [vmem:[%s618_s3 + $0x8] sm:$0xff]  ;;  %v127_v9 = vld [vmem:[%s618_s3 + $0x18] sm:$0xff]  ;;  %v39_v10 = vld [vmem:[#allocation2] sm:$0xff] }
  0x15   :  { %v400_v8 = vpack.c.bf16 %v125_v6, %v124_v5  ;;  %v403_v11 = vpack.c.bf16 %v127_v9, %v126_v7  ;;  %v128_v12 = vld [vmem:[%s618_s3 + $0x20] sm:$0xff]  ;;  %v129_v13 = vld [vmem:[%s618_s3 + $0x28] sm:$0xff]  ;;  %v130_v15 = vld [vmem:[%s618_s3 + $0x30] sm:$0xff] }
  0x16   :  { %398 = vmatpush3.bf16.msra.mxu0 %v397_v4  ;;  %v406_v14 = vpack.c.bf16 %v129_v13, %v128_v12  ;;  %v131_v16 = vld [vmem:[%s618_s3 + $0x38] sm:$0xff]  ;;  %v214_v18 = vld [vmem:[%s620_s5] sm:$0xff]  ;;  %v215_v19 = vld [vmem:[%s620_s5 + $0x8] sm:$0xff] }
  0x17   :  { %401 = vmatpush3.bf16.msra.mxu1 %v400_v8  ;;  %411 = vmatprep.subr.bf16.mxu0 %v481_v0  ;;  %v409_v17 = vpack.c.bf16 %v131_v16, %v130_v15  ;;  %v216_v20 = vld [vmem:[%s620_s5 + $0x10] sm:$0xff]  ;;  %v412_v21 = vpack.c.bf16 %v215_v19, %v214_v18  ;;  %v217_v22 = vld [vmem:[%s620_s5 + $0x18] sm:$0xff]  ;;  %v218_v24 = vld [vmem:[%s620_s5 + $0x20] sm:$0xff] }
  0x18   :  { %402 = vmatprep.subr.bf16.mxu1 %v481_v0  ;;  %v415_v23 = vpack.c.bf16 %v217_v22, %v216_v20  ;;  %v219_v25 = vld [vmem:[%s620_s5 + $0x28] sm:$0xff]  ;;  %v324_v27 = vld [vmem:[%s617_s2] ss:$0 sm:$0xff]  ;;  %v220_v32 = vld [vmem:[%s620_s5 + $0x30] sm:$0xff] }
  0x19   :  { %356 = vmatmul.mubr.msk.f32.vlgmr.msra.gmra.mrb[0].mxu0 %vm49_vm1, %v39_v10  ;;  %v418_v26 = vpack.c.bf16 %v219_v25, %v218_v24  ;;  %v221_v33 = vld [vmem:[%s620_s5 + $0x38] sm:$0xff]  ;;  %v326_v35 = vld [vmem:[%s619_s4] ss:$0 sm:$0xff]  ;;  %s484_s5 = smov [#allocation5]  }
  0x1a   :  { %393 = vmatprep.mubr.msk.f32.mxu0 %vm482_vm0, %v483_v1  ;;  %413 = vmatpush3.bf16.msra.mxu0 %v412_v21  ;;  %v421_v34 = vpack.c.bf16 %v221_v33, %v220_v32  ;;  %v328_v40 = vld [vmem:[%s621_s6] ss:$0 sm:$0xff]  ;;  %s315_s4 = sshll.u32 %s484_s5, 4  ;;  %s316_s4 = int_to_ptr.vmem [resolvable:$true] %s315_s4 }
  0x1b   :  { %404 = vmatpush3.bf16.msra.mxu1 %v403_v11  ;;  %414 = vmatprep.subr.bf16.mxu0 %v481_v0  ;;  %s454_s26 = scalar_lea.vmem %s316_s4, 128  ;;  %p459_p9 = scmp.lt.s32.totalorder %s316_s4, %s316_s4 }
  0x1c   :  { %405 = vmatprep.subr.bf16.mxu1 %v481_v0  ;;  %p455_p8 = scmp.ne.s32.totalorder %s316_s4, %s454_s26  ;;  %p460_p10 = scmp.lt.s32.totalorder %s454_s26, %s454_s26 }
  0x1e   :  { %416 = vmatpush3.bf16.msra.mxu0 %v415_v23  ;;  %p461_p11 = por %p460_p10, %p459_p9 }
  0x1f   :  { %407 = vmatpush3.bf16.msra.mxu1 %v406_v14  ;;  %417 = vmatprep.subr.bf16.mxu0 %v481_v0 }
  0x20   :  { %408 = vmatprep.subr.bf16.mxu1 %v481_v0  ;;  %p462_p12 = pnand %p461_p11, %p455_p8 }
  0x22   :  { %419 = vmatpush3.bf16.msra.mxu0 %v418_v26 }
  0x23   :  { %410 = vmatpush3.bf16.msra.mxu1 %v409_v17  ;;  %420 = vmatprep.subr.bf16.mxu0 %v481_v0 }
  0x26   :  { %422 = vmatpush3.bf16.msra.mxu0 %v421_v34 }
  0xec   :  { %v119_v28 = vpop.f32.mrb[0].mxu0 }
  0xed   :  { %v120_v29 = vadd.f32 %v324_v27, %v119_v28  ;;  %v357_v30 = vpop.f32.mrb[1].mxu0 }
  0xef   :  { %v123_v31 = vmax.f32 %v120_v29, 0.0 }
  0xf1   :  { %375 = vmatmul.mubr.msk.f32.vlgmr.msra.gmra.mrb[0].mxu1 %vm139_vm2, %v123_v31 }
 0x1c4   :  { %v209_v36 = vpop.f32.mrb[0].mxu1 }
 0x1c5   :  { %v210_v37 = vadd.f32 %v326_v35, %v209_v36  ;;  %v376_v38 = vpop.f32.mrb[1].mxu1 }
 0x1c7   :  { %v213_v39 = vmax.f32 %v210_v37, 0.0 }
 0x1c9   :  { %394 = vmatmul.mubr.msk.f32.vlgmr.msra.gmra.mrb[2].mxu0 %vm139_vm2, %v213_v39 }
 0x29c   :  { %v298_v41 = vpop.f32.mrb[2].mxu0 }
 0x29d   :  { %v299_v42 = vadd.f32 %v328_v40, %v298_v41  ;;  %v395_v43 = vpop.f32.mrb[3].mxu0 }
 0x29f   :  { %v302_v44 = vsub.f32 0.0, %v299_v42 }
 0x2a1   :  { %v303_v45 = vmul.f32 1.442695, %v302_v44 }
 0x2a3   :  { %428 = vpow2.f32 %v303_v45 }
 0x2ad   :  { %v429_v46 = vpop.eup %428 }
 0x2ae   :  { %v305_v47 = vadd.f32 1.0, %v429_v46 }
 0x2b0   :  { %430 = vrcp.f32 %v305_v47 }
 0x2ba   :  { %v431_v48 = vpop.eup %430 }
 0x2bb   :  { %308 = vst.msk [vmem:[#allocation5] sm:$0xff] %vm307_vm3, %v431_v48 }
 0x2bc   :  { %465 = shalt.err (!%p462_p12)
}
 0x2bd   :  { %s466_s28 = scalar_lea.hbm %s622_s7, 128 }
 0x2be   :  { %p467_p13 = scmp.ne.s32.totalorder %s622_s7, %s466_s28  ;;  %p470_p0 = scmp.lt.u32.totalorder %s466_s28, %s622_s7 }
 0x2c0   :  { %p472_p1 = pnand %p470_p0, %p467_p13 }
 0x2c2   :  { %475 = shalt.err (!%p472_p1)
}
 0x2c3   :  { %318 = dma.vmem_to_hbm [thread:$0]  %s316_s4, 128, %s622_s7, [#allocation4]  }
 0x2c4   :  { %478 = dma.done.wait [#allocation4], 128  }
 0x2c5   :  { %479 = vsyncadd [#allocation4], 4294967168 }
 0x2c6   :  { %322 = vsyncpa [#allocation3], 1 }
 0x2c7   :  { %323 = vsyncpa [#allocation4], 1 }

</bundles_post_ra>
